<compile_context>
chip_gen: v6e
topology: v6e:2x2x1
jax: 0.10.0
libtpu: 0.0.40
codegen_flags: <defaults>
</compile_context>

<pallas_src>
import jax
import jax.numpy as jnp
from jax.experimental import pallas as pl
from jax.experimental.pallas import tpu as pltpu

PLAYER_NUM = 2          # AHP['player_num']
STATE_EMBED_SIZE = 64   # AHP['state_embed_size']
CONCAT_DIM = 128        # 48 + 64 + 16
_LANE = 128
_SUBLANE = 8


def _round_up(x, m):
    return ((x + m - 1) // m) * m


def encoder_kernel(x_ref, w1_ref, b1_ref, w2_ref, b2_ref, out_ref):
    # In-kernel `x.float() / 10` (matches torch exactly; avoids a separate
    # whole-array XLA cast/scale pass over HBM before the kernel).
    x = x_ref[...].astype(jnp.float32) / jnp.float32(10.0)
    w1 = w1_ref[...]
    # Fused (and batch-folded) block-diagonal branch embed -> [TB, 128*fold]
    h1 = jnp.dot(x.astype(w1.dtype), w1, preferred_element_type=jnp.float32)
    h1 = jnp.maximum(h1 + b1_ref[...], 0.0)
    w2 = w2_ref[...]
    # fc over the folded state -> [TB, E*fold] (128 lanes when fold=128//E)
    h2 = jnp.dot(h1.astype(w2.dtype), w2, preferred_element_type=jnp.float32)
    out_ref[...] = jnp.maximum(h2 + b2_ref[...], 0.0).astype(out_ref.dtype)


def make_params(key, player_num=PLAYER_NUM, embed=STATE_EMBED_SIZE):
    """Deterministic PyTorch-Linear-style init (uniform +-1/sqrt(fan_in)).
    Weights stored as (in, out) so forward is x @ W + b."""
    def linear(k, fan_in, fan_out):
        kw, kb = jax.random.split(k)
        bound = 1.0 / jnp.sqrt(jnp.float32(fan_in))
        w = jax.random.uniform(kw, (fan_in, fan_out), jnp.float32, -bound, bound)
        b = jax.random.uniform(kb, (1, fan_out), jnp.float32, -bound, bound)
        return w, b

    k1, k2, k3, k4 = jax.random.split(key, 4)
    w_pos, b_pos = linear(k1, 2 * player_num, 48)
    w_act, b_act = linear(k2, 3 * player_num, 64)
    w_st,  b_st  = linear(k3, player_num, 16)
    w_fc,  b_fc  = linear(k4, CONCAT_DIM, embed)
    return dict(w_pos=w_pos, b_pos=b_pos, w_act=w_act, b_act=b_act,
                w_st=w_st, b_st=b_st, w_fc=w_fc, b_fc=b_fc)


def _block_diag(w, n):
    """blockdiag(w, ..., w) with n copies (host-side, tiny)."""
    if n == 1:
        return w
    din, dout = w.shape
    out = jnp.zeros((n * din, n * dout), w.dtype)
    for i in range(n):
        out = out.at[i * din:(i + 1) * din, i * dout:(i + 1) * dout].set(w)
    return out


def fuse_branch_params(params, player_num, fold=1, mxu_dtype=jnp.float32):
    """Fused first-layer weight: block-diagonal (pos|action|stock) in concat
    order, rows permuted to the player-major order of x.reshape(B, 6P); then
    batch-fold both layers by duplicating blocks along the diagonal."""
    P = player_num
    w1 = jnp.zeros((6 * P, CONCAT_DIM), jnp.float32)
    w1 = w1.at[:2 * P, 0:48].set(params["w_pos"])
    w1 = w1.at[2 * P:5 * P, 48:112].set(params["w_act"])
    w1 = w1.at[5 * P:, 112:128].set(params["w_st"])
    perm = []
    for p in range(P):
        perm += [2 * p, 2 * p + 1]                                    # pos_x, pos_y
        perm += [2 * P + 3 * p, 2 * P + 3 * p + 1, 2 * P + 3 * p + 2]  # actions
        perm += [5 * P + p]                                           # stock
    w1 = w1[jnp.array(perm), :]
    b1 = jnp.concatenate([params["b_pos"], params["b_act"], params["b_st"]],
                         axis=1)
    w2, b2 = params["w_fc"], params["b_fc"]

    w1 = _block_diag(w1, fold)              # [6P*fold, 128*fold]
    w2 = _block_diag(w2, fold)              # [128*fold, E*fold]
    b1 = jnp.tile(b1, (1, fold))            # [1, 128*fold]
    b2 = jnp.tile(b2, (1, fold))            # [1, E*fold]
    return w1.astype(mxu_dtype), b1, w2.astype(mxu_dtype), b2


def encoder_forward(x, params, *, batch_tile=8192, out_dtype=jnp.float32,
                    mxu_dtype=jnp.float32):
    """x: [B, P, 6] (any numeric dtype; cast happens in-kernel).
    Returns [B, STATE_EMBED_SIZE] in `out_dtype` (bf16 recommended for large
    inference batches). `mxu_dtype=jnp.bfloat16` speeds up v5e's MXU while
    keeping f32 accumulation."""
    B, P, F = x.shape
    assert F == 6
    d_in = P * F
    E = params["w_fc"].shape[1]

    # Fold factor so the kernel's output block is a full 128-lane vreg width.
    fold = (128 // E) if (E < 128 and 128 % E == 0) else 1
    d_in_f, E_f = d_in * fold, E * fold

    w1, b1, w2, b2 = fuse_branch_params(params, P, fold=fold, mxu_dtype=mxu_dtype)

    # ---- tile / grid selection: >=4 grid steps when the batch allows, tiles
    # capped at batch_tile original rows, folded rows a multiple of 8. -------
    Bf_raw = pl.cdiv(B, fold)
    cap = max(_SUBLANE, (batch_tile // fold) // _SUBLANE * _SUBLANE)
    TBf = min(cap, max(_SUBLANE, _round_up(pl.cdiv(Bf_raw, 4), _SUBLANE)))
    steps = pl.cdiv(Bf_raw, TBf)
    Bf = steps * TBf
    Bp = Bf * fold

    # Contiguous row-major reshapes (free); pad only when the batch is ragged.
    # TODO(synk): a masked tail tile would avoid this jnp.pad copy for large ragged B.
    x12 = x.reshape(B, d_in)
    if Bp != B:
        x12 = jnp.pad(x12, ((0, Bp - B), (0, 0)))
    xf = x12.reshape(Bf, d_in_f)

    # Scoped-VMEM limit sized to the actual double-buffered blocks (+headroom),
    # so large tiles also fit under v5e's 16 MiB scoped default.
    in_bytes = TBf * _round_up(d_in_f, _LANE) * jnp.dtype(x.dtype).itemsize
    out_bytes = TBf * _round_up(E_f, _LANE) * jnp.dtype(out_dtype).itemsize
    h1_bytes = TBf * _round_up(CONCAT_DIM * fold, _LANE) * 4
    w_bytes = ((w1.size + w2.size) * jnp.dtype(mxu_dtype).itemsize
               + (b1.size + b2.size) * 4)
    vmem_limit = int(2 * (in_bytes + out_bytes) + 2 * h1_bytes + 2 * w_bytes
                     + (2 << 20))
    vmem_limit = min(max(vmem_limit, 16 << 20), 48 << 20)

    out = pl.pallas_call(
        encoder_kernel,
        out_shape=jax.ShapeDtypeStruct((Bf, E_f), out_dtype),
        grid=(steps,),
        in_specs=[
            pl.BlockSpec((TBf, d_in_f), lambda i: (i, 0)),               # activations
            pl.BlockSpec((d_in_f, CONCAT_DIM * fold), lambda i: (0, 0)),  # VMEM-resident
            pl.BlockSpec((1, CONCAT_DIM * fold), lambda i: (0, 0)),
            pl.BlockSpec((CONCAT_DIM * fold, E_f), lambda i: (0, 0)),
            pl.BlockSpec((1, E_f), lambda i: (0, 0)),
        ],
        out_specs=pl.BlockSpec((TBf, E_f), lambda i: (i, 0)),
        compiler_params=pltpu.CompilerParams(
            dimension_semantics=("parallel",),
            vmem_limit_bytes=vmem_limit),
    )(xf, w1, b1, w2, b2)

    out = out.reshape(Bp, E)
    return out[:B] if Bp != B else out


def encoder_reference(x, params):
    """Pure-JAX reference replicating the torch forward exactly."""
    x = x.astype(jnp.float32) / 10.0
    B, P, _ = x.shape
    pos = x[:, :, :2].reshape(B, 2 * P)
    act = x[:, :, 2:5].reshape(B, 3 * P)
    st = x[:, :, 5].reshape(B, P)
    pe = jax.nn.relu(pos @ params["w_pos"] + params["b_pos"])
    ae = jax.nn.relu(act @ params["w_act"] + params["b_act"])
    se = jax.nn.relu(st @ params["w_st"] + params["b_st"])
    state = jnp.concatenate([pe, ae, se], axis=1)
    return jax.nn.relu(state @ params["w_fc"] + params["b_fc"])


if __name__ == "__main__":
    key = jax.random.PRNGKey(0)
    kx, kp, kx2 = jax.random.split(key, 3)

    params = make_params(kp)

    # Small batch: single minimum tile (grid of 1 is unavoidable at B=8).
    B = 8
    x = jax.random.normal(kx, (B, PLAYER_NUM, 6), dtype=jnp.float32) * 10.0
    out = jax.block_until_ready(encoder_forward(x, params))
    ref = encoder_reference(x, params)
    assert out.shape == (B, STATE_EMBED_SIZE)
    assert jnp.allclose(out, ref, atol=1e-4, rtol=1e-4), "mismatch (small batch)"

    # Larger, non-tile-multiple batch: exercises the 4-step grid + pad/slice
    # + lane-dense folded output path.
    B2 = 600
    x2 = jax.random.normal(kx2, (B2, PLAYER_NUM, 6), dtype=jnp.float32) * 10.0
    out2 = jax.block_until_ready(encoder_forward(x2, params, batch_tile=256))
    ref2 = encoder_reference(x2, params)
    assert out2.shape == (B2, STATE_EMBED_SIZE)
    assert jnp.allclose(out2, ref2, atol=1e-4, rtol=1e-4), "mismatch (gridded batch)"

    # Integer input path: cast + /10 happens inside the kernel.
    x_int = jnp.round(x2).astype(jnp.int32)
    out_i = jax.block_until_ready(encoder_forward(x_int, params, batch_tile=256))
    ref_i = encoder_reference(x_int, params)
    assert jnp.allclose(out_i, ref_i, atol=1e-4, rtol=1e-4), "mismatch (int input)"

    # bf16 output path (halves the dominant HBM store; f32 accumulation kept).
    out_bf16 = jax.block_until_ready(
        encoder_forward(x2, params, batch_tile=256, out_dtype=jnp.bfloat16))
    assert jnp.allclose(out_bf16.astype(jnp.float32), ref2, atol=5e-2, rtol=5e-2), \
        "mismatch (bf16 output)"

    # bf16 MXU operands (v5e lever; f32 accumulation via preferred_element_type).
    out_bw = jax.block_until_ready(
        encoder_forward(x2, params, batch_tile=256, mxu_dtype=jnp.bfloat16))
    assert jnp.allclose(out_bw, ref2, atol=5e-2, rtol=5e-2), \
        "mismatch (bf16 MXU operands)"

    print("KERNEL_OK")
</pallas_src>

<mosaic_0001>
module attributes {stable_mosaic.version = 11 : i64} {
  func.func @encoder_kernel(%arg0: i32, %arg1: memref<8x24xf32, #tpu.memory_space<vmem>>, %arg2: memref<24x256xf32, #tpu.memory_space<vmem>>, %arg3: memref<1x256xf32, #tpu.memory_space<vmem>>, %arg4: memref<256x128xf32, #tpu.memory_space<vmem>>, %arg5: memref<1x128xf32, #tpu.memory_space<vmem>>, %arg6: memref<8x128xf32, #tpu.memory_space<vmem>>) attributes {dimension_semantics = [#tpu.dimension_semantics<parallel>], iteration_bounds = array<i64: 1>, scalar_prefetch = 0 : i64, scratch_operands = 0 : i64, tpu.core_type = #tpu.core_type<tc>, window_params = [{transform_indices = @transform_0, window_bounds = array<i64: 8, 24>}, {pipeline_mode = #tpu.pipeline_mode<synchronous>, transform_indices = @transform_1, window_bounds = array<i64: 24, 256>}, {pipeline_mode = #tpu.pipeline_mode<synchronous>, transform_indices = @transform_2, window_bounds = array<i64: 1, 256>}, {pipeline_mode = #tpu.pipeline_mode<synchronous>, transform_indices = @transform_3, window_bounds = array<i64: 256, 128>}, {pipeline_mode = #tpu.pipeline_mode<synchronous>, transform_indices = @transform_4, window_bounds = array<i64: 1, 128>}, {transform_indices = @transform_5, window_bounds = array<i64: 8, 128>}]} {
    %c0 = arith.constant 0 : index
    %c0_0 = arith.constant 0 : index
    %0 = vector.load %arg1[%c0, %c0_0] : memref<8x24xf32, #tpu.memory_space<vmem>>, vector<8x24xf32>
    %cst = arith.constant 1.000000e+01 : f32
    %1 = vector.broadcast %cst : f32 to vector<8x24xf32>
    %2 = arith.divf %0, %1 : vector<8x24xf32>
    %c0_1 = arith.constant 0 : index
    %c0_2 = arith.constant 0 : index
    %3 = vector.load %arg2[%c0_1, %c0_2] : memref<24x256xf32, #tpu.memory_space<vmem>>, vector<24x256xf32>
    %cst_3 = arith.constant dense<0.000000e+00> : vector<8x256xf32>
    %4 = tpu.matmul %2, %3, %cst_3 {dimension_numbers = #tpu.dot_dimension_numbers<[1], [0], [0], [1], [0, 0, 1, 1], [], []>} : vector<8x24xf32>, vector<24x256xf32>, vector<8x256xf32> -> vector<8x256xf32>
    %c0_4 = arith.constant 0 : index
    %c0_5 = arith.constant 0 : index
    %5 = vector.load %arg3[%c0_4, %c0_5] : memref<1x256xf32, #tpu.memory_space<vmem>>, vector<1x256xf32>
    %6 = vector.broadcast %5 : vector<1x256xf32> to vector<8x256xf32>
    %7 = arith.addf %4, %6 : vector<8x256xf32>
    %cst_6 = arith.constant 0.000000e+00 : f32
    %8 = vector.broadcast %cst_6 : f32 to vector<8x256xf32>
    %9 = arith.maximumf %7, %8 : vector<8x256xf32>
    %c0_7 = arith.constant 0 : index
    %c0_8 = arith.constant 0 : index
    %10 = vector.load %arg4[%c0_7, %c0_8] : memref<256x128xf32, #tpu.memory_space<vmem>>, vector<256x128xf32>
    %cst_9 = arith.constant dense<0.000000e+00> : vector<8x128xf32>
    %11 = tpu.matmul %9, %10, %cst_9 {dimension_numbers = #tpu.dot_dimension_numbers<[1], [0], [0], [1], [0, 0, 1, 1], [], []>} : vector<8x256xf32>, vector<256x128xf32>, vector<8x128xf32> -> vector<8x128xf32>
    %c0_10 = arith.constant 0 : index
    %c0_11 = arith.constant 0 : index
    %12 = vector.load %arg5[%c0_10, %c0_11] : memref<1x128xf32, #tpu.memory_space<vmem>>, vector<1x128xf32>
    %13 = vector.broadcast %12 : vector<1x128xf32> to vector<8x128xf32>
    %14 = arith.addf %11, %13 : vector<8x128xf32>
    %cst_12 = arith.constant 0.000000e+00 : f32
    %15 = vector.broadcast %cst_12 : f32 to vector<8x128xf32>
    %16 = arith.maximumf %14, %15 : vector<8x128xf32>
    %c0_13 = arith.constant 0 : index
    %c0_14 = arith.constant 0 : index
    %17 = vector.load %arg6[%c0_13, %c0_14] : memref<8x128xf32, #tpu.memory_space<vmem>>, vector<8x128xf32>
    tpu.vector_store %arg6[%c0_13, %c0_14], %16 {strides = array<i32>} : memref<8x128xf32, #tpu.memory_space<vmem>>, vector<8x128xf32>,
    return
  }
  func.func @transform_0(%arg0: i32) -> (i32, i32) {
    %c0_i32 = arith.constant 0 : i32
    %c0_i32_0 = arith.constant 0 : i32
    return %arg0, %c0_i32 : i32, i32
  }
  func.func @transform_1(%arg0: i32) -> (i32, i32) {
    %c0_i32 = arith.constant 0 : i32
    %c0_i32_0 = arith.constant 0 : i32
    %c0_i32_1 = arith.constant 0 : i32
    return %c0_i32, %c0_i32_0 : i32, i32
  }
  func.func @transform_2(%arg0: i32) -> (i32, i32) {
    %c0_i32 = arith.constant 0 : i32
    %c0_i32_0 = arith.constant 0 : i32
    %c0_i32_1 = arith.constant 0 : i32
    return %c0_i32, %c0_i32_0 : i32, i32
  }
  func.func @transform_3(%arg0: i32) -> (i32, i32) {
    %c0_i32 = arith.constant 0 : i32
    %c0_i32_0 = arith.constant 0 : i32
    %c0_i32_1 = arith.constant 0 : i32
    return %c0_i32, %c0_i32_0 : i32, i32
  }
  func.func @transform_4(%arg0: i32) -> (i32, i32) {
    %c0_i32 = arith.constant 0 : i32
    %c0_i32_0 = arith.constant 0 : i32
    %c0_i32_1 = arith.constant 0 : i32
    return %c0_i32, %c0_i32_0 : i32, i32
  }
  func.func @transform_5(%arg0: i32) -> (i32, i32) {
    %c0_i32 = arith.constant 0 : i32
    %c0_i32_0 = arith.constant 0 : i32
    return %arg0, %c0_i32 : i32, i32
  }
}

</mosaic_0001>

<bundles_post_ra>
// kernel: tpu_custom_call.1
= control target key start
LH: loop header
LB: loop body
LE: loop exit
PB: predicated region body
PF: predicated region fallthrough
CT: control target
= control target key end

     0   :  { %10 = vsyncpa [#allocation3], 0  ;;  %s474_s0 = inlined_call_operand.hbm [shape: f32[8,24], index: 0, kind: input, shape index: {}]   ;;  %s475_s1 = inlined_call_operand.hbm [shape: f32[24,256], index: 1, kind: input, shape index: {}]   ;;  %s476_s2 = inlined_call_operand.vmem [shape: f32[1,256], index: 2, kind: input, shape index: {}]   ;;  %s477_s3 = inlined_call_operand.hbm [shape: f32[256,128], index: 3, kind: input, shape index: {}]   ;;  %s478_s4 = inlined_call_operand.vmem [shape: f32[1,128], index: 4, kind: input, shape index: {}]   ;;  %s479_s5 = inlined_call_operand.hbm [shape: f32[8,128], index: 5, kind: output, shape index: {}]  }
   0x1   :  { %11 = vsyncpa [#allocation6], 0 }
   0x2   :  { %12 = vsyncpa [#allocation4], 0  ;;  %s417_s18 = smov [#allocation5]  }
   0x3   :  { %s28_s19 = sshll.u32 %s417_s18, 4  ;;  %s29_s19 = int_to_ptr.vmem [resolvable:$true] %s28_s19 }
   0x4   :  { %s339_s20 = scalar_lea.vmem %s29_s19, 768  ;;  %p344_p1 = scmp.lt.s32.totalorder %s29_s19, %s29_s19 }
   0x5   :  { %p340_p0 = scmp.ne.s32.totalorder %s29_s19, %s339_s20  ;;  %p345_p2 = scmp.lt.s32.totalorder %s339_s20, %s339_s20 }
   0x7   :  { %p346_p3 = por %p345_p2, %p344_p1 }
   0x9   :  { %p347_p4 = pnand %p346_p3, %p340_p0 }
   0xb   :  { %350 = shalt.err (!%p347_p4)
}
   0xc   :  { %s418_s21 = smov 256   ;;  %s419_s22 = smov 16  }
   0xd   :  { %34 = dma.hbm_to_vmem [thread:$0]  %s475_s1, 768, %s29_s19, [#allocation6], %s418_s21, %s418_s21, %s419_s22  }
   0xe   :  { %s420_s25 = smov [#allocation2]   ;;  %s421_s27 = smov [#allocation7]  }
   0xf   :  { %s19_s26 = sshll.u32 %s420_s25, 4  ;;  %s42_s28 = sshll.u32 %s421_s27, 4  ;;  %s20_s26 = int_to_ptr.vmem [resolvable:$true] %s19_s26  ;;  %s43_s28 = int_to_ptr.vmem [resolvable:$true] %s42_s28 }
  0x10   :  { %s359_s29 = scalar_lea.vmem %s20_s26, 128  ;;  %p364_p6 = scmp.lt.s32.totalorder %s20_s26, %s20_s26 }
  0x11   :  { %p360_p5 = scmp.ne.s32.totalorder %s20_s26, %s359_s29  ;;  %p365_p7 = scmp.lt.s32.totalorder %s359_s29, %s359_s29 }
  0x13   :  { %p366_p8 = por %p365_p7, %p364_p6 }
  0x15   :  { %p367_p9 = pnand %p366_p8, %p360_p5 }
  0x17   :  { %370 = shalt.err (!%p367_p9)
}
  0x18   :  { %22 = dma.hbm_to_vmem [thread:$0]  %s474_s0, 128, %s20_s26, [#allocation3]  }
  0x19   :  { %s379_s7 = scalar_lea.vmem %s43_s28, 4096  ;;  %p384_p11 = scmp.lt.s32.totalorder %s43_s28, %s43_s28 }
  0x1a   :  { %p380_p10 = scmp.ne.s32.totalorder %s43_s28, %s379_s7  ;;  %p385_p12 = scmp.lt.s32.totalorder %s379_s7, %s379_s7 }
  0x1c   :  { %p386_p13 = por %p385_p12, %p384_p11 }
  0x1e   :  { %p387_p0 = pnand %p386_p13, %p380_p10 }
  0x20   :  { %390 = shalt.err (!%p387_p0)
}
  0x21   :  { %s422_s1 = smov 128   ;;  %s423_s8 = smov 8  }
  0x22   :  { %48 = dma.hbm_to_vmem [thread:$0]  %s477_s3, 4096, %s43_s28, [#allocation6], %s422_s1, %s422_s1, %s423_s8  }
  0x23   :  { %411 = dma.done.wait [#allocation3], 128  }
  0x24   :  { %412 = vsyncadd [#allocation3], 4294967168 }
  0x25   :  { %413 = dma.done.wait [#allocation6], 4864  }
  0x26   :  { %414 = vsyncadd [#allocation6], 4294962432  ;;  %v424_v0 = vmov 0.0   ;;  %v68_v1 = vld [vmem:[#allocation5 + $0x28] sm:$0xff]  ;;  %v67_v2 = vld [vmem:[#allocation5 + $0x20] sm:$0xff]  ;;  %vm81_vm0 = vcmask 195584   ;;  %v71_v41 = vlaneseq }
  0x27   :  { %149 = vmatprep.mubr.f32.mxu0 %v424_v0  ;;  %v66_v3 = vld [vmem:[#allocation5 + $0x18] sm:$0xff]  ;;  %111 = vmatprep.subr.mxu0 %v68_v1  ;;  %v65_v4 = vld [vmem:[#allocation5 + $0x10] sm:$0xff]  ;;  %v64_v5 = vld [vmem:[#allocation5 + $0x8] sm:$0xff]  ;;  %s425_s13 = smov [#allocation8]  }
  0x28   :  { %112 = vmatpush1.msra.mxu0 %v67_v2  ;;  %v60_v6 = vld [vmem:[#allocation2] sm:$0xff]  ;;  %v189_v7 = vld [vmem:[#allocation7 + $0xf8] sm:$0xff]  ;;  %v63_v9 = vld [vmem:[#allocation5] sm:$0xff]  ;;  %v72_v42 = vshrl.u32 %v71_v41, 7 }
  0x29   :  { %v173_v8 = vld [vmem:[#allocation7 + $0x78] sm:$0xff]  ;;  %113 = vmatprep.subr.mxu0 %v66_v3  ;;  %v62_v10 = vmul.f32 0.1, %v60_v6  ;;  %287 = vmatprep.subr.mxu1 %v189_v7  ;;  %v188_v11 = vld [vmem:[#allocation7 + $0xf0] sm:$0xff]  ;;  %v187_v13 = vld [vmem:[#allocation7 + $0xe8] sm:$0xff] }
  0x2a   :  { %v172_v12 = vld [vmem:[#allocation7 + $0x70] sm:$0xff]  ;;  %114 = vmatpush1.msra.mxu0 %v65_v4  ;;  %288 = vmatpush3.msra.mxu1 %v173_v8  ;;  %v171_v14 = vld [vmem:[#allocation7 + $0x68] sm:$0xff]  ;;  %v186_v15 = vld [vmem:[#allocation7 + $0xe0] sm:$0xff]  ;;  %v73_v43 = vsub.s32 0, %v72_v42  ;;  %v77_v45 = vsub.s32 1, %v72_v42 }
  0x2b   :  { %115 = vmatprep.subr.mxu0 %v64_v5  ;;  %289 = vmatprep.subr.mxu1 %v188_v11  ;;  %v170_v16 = vld [vmem:[#allocation7 + $0x60] sm:$0xff]  ;;  %v185_v17 = vld [vmem:[#allocation7 + $0xd8] sm:$0xff]  ;;  %v184_v19 = vld [vmem:[#allocation7 + $0xd0] sm:$0xff] }
  0x2c   :  { %116 = vmatpush1.msra.mxu0 %v63_v9  ;;  %290 = vmatpush3.msra.mxu1 %v172_v12  ;;  %v169_v18 = vld [vmem:[#allocation7 + $0x58] sm:$0xff]  ;;  %v168_v20 = vld [vmem:[#allocation7 + $0x50] sm:$0xff]  ;;  %v183_v21 = vld [vmem:[#allocation7 + $0xc8] sm:$0xff] }
  0x2d   :  { %285 = vmatmul.mubr.msk.f32.vlgmr.msra.gmra.mxu0 %vm81_vm0, %v62_v10  ;;  %291 = vmatprep.subr.mxu1 %v187_v13  ;;  %v167_v22 = vld [vmem:[#allocation7 + $0x48] sm:$0xff]  ;;  %v182_v23 = vld [vmem:[#allocation7 + $0xc0] sm:$0xff]  ;;  %v181_v25 = vld [vmem:[#allocation7 + $0xb8] sm:$0xff] }
  0x2e   :  { %292 = vmatpush3.msra.mxu1 %v171_v14  ;;  %v166_v24 = vld [vmem:[#allocation7 + $0x40] sm:$0xff]  ;;  %v165_v26 = vld [vmem:[#allocation7 + $0x38] sm:$0xff]  ;;  %v180_v27 = vld [vmem:[#allocation7 + $0xb0] sm:$0xff] }
  0x2f   :  { %293 = vmatprep.subr.mxu1 %v186_v15  ;;  %v164_v28 = vld [vmem:[#allocation7 + $0x30] sm:$0xff]  ;;  %v179_v29 = vld [vmem:[#allocation7 + $0xa8] sm:$0xff]  ;;  %v178_v31 = vld [vmem:[#allocation7 + $0xa0] sm:$0xff] }
  0x30   :  { %294 = vmatpush3.msra.mxu1 %v170_v16  ;;  %v163_v30 = vld [vmem:[#allocation7 + $0x28] sm:$0xff]  ;;  %v162_v32 = vld [vmem:[#allocation7 + $0x20] sm:$0xff]  ;;  %v177_v33 = vld [vmem:[#allocation7 + $0x98] sm:$0xff] }
  0x31   :  { %295 = vmatprep.subr.mxu1 %v185_v17  ;;  %v161_v34 = vld [vmem:[#allocation7 + $0x18] sm:$0xff]  ;;  %v176_v35 = vld [vmem:[#allocation7 + $0x90] sm:$0xff]  ;;  %v175_v37 = vld [vmem:[#allocation7 + $0x88] sm:$0xff] }
  0x32   :  { %296 = vmatpush3.msra.mxu1 %v169_v18  ;;  %v160_v36 = vld [vmem:[#allocation7 + $0x10] sm:$0xff]  ;;  %v159_v38 = vld [vmem:[#allocation7 + $0x8] sm:$0xff]  ;;  %v174_v39 = vld [vmem:[#allocation7 + $0x80] sm:$0xff] }
  0x33   :  { %297 = vmatprep.subr.mxu1 %v184_v19  ;;  %v158_v40 = vld [vmem:[#allocation7] sm:$0xff]  ;;  %v69_v44 = vld [vmem:[%s476_s2] sm:$0x3]  ;;  %s275_s2 = sshll.u32 %s425_s13, 4  ;;  %s276_s2 = int_to_ptr.vmem [resolvable:$true] %s275_s2 }
  0x34   :  { %298 = vmatpush3.msra.mxu1 %v168_v20  ;;  %v74_v46 = vrot.slane %v69_v44, %v73_v43  ;;  %v78_v47 = vrot.slane %v69_v44, %v77_v45  ;;  %v286_v55 = vld [vmem:[%s478_s4] ss:$0 sm:$0xff]  ;;  %s391_s14 = scalar_lea.vmem %s276_s2, 128  ;;  %p396_p2 = scmp.lt.s32.totalorder %s276_s2, %s276_s2 }
  0x35   :  { %299 = vmatprep.subr.mxu1 %v183_v21  ;;  %p392_p1 = scmp.ne.s32.totalorder %s276_s2, %s391_s14  ;;  %p397_p3 = scmp.lt.s32.totalorder %s391_s14, %s391_s14 }
  0x36   :  { %300 = vmatpush3.msra.mxu1 %v167_v22 }
  0x37   :  { %301 = vmatprep.subr.mxu1 %v182_v23  ;;  %p398_p4 = por %p397_p3, %p396_p2 }
  0x38   :  { %302 = vmatpush3.msra.mxu1 %v166_v24 }
  0x39   :  { %303 = vmatprep.subr.mxu1 %v181_v25  ;;  %p399_p5 = pnand %p398_p4, %p392_p1 }
  0x3a   :  { %304 = vmatpush3.msra.mxu1 %v165_v26 }
  0x3b   :  { %305 = vmatprep.subr.mxu1 %v180_v27 }
  0x3c   :  { %306 = vmatpush3.msra.mxu1 %v164_v28 }
  0x3d   :  { %307 = vmatprep.subr.mxu1 %v179_v29 }
  0x3e   :  { %308 = vmatpush3.msra.mxu1 %v163_v30 }
  0x3f   :  { %309 = vmatprep.subr.mxu1 %v178_v31 }
  0x40   :  { %310 = vmatpush3.msra.mxu1 %v162_v32 }
  0x41   :  { %311 = vmatprep.subr.mxu1 %v177_v33 }
  0x42   :  { %312 = vmatpush3.msra.mxu1 %v161_v34 }
  0x43   :  { %313 = vmatprep.subr.mxu1 %v176_v35 }
  0x44   :  { %314 = vmatpush3.msra.mxu1 %v160_v36 }
  0x45   :  { %315 = vmatprep.subr.mxu1 %v175_v37 }
  0x46   :  { %316 = vmatpush3.msra.mxu1 %v159_v38 }
  0x47   :  { %317 = vmatprep.subr.mxu1 %v174_v39 }
  0x48   :  { %318 = vmatpush3.msra.mxu1 %v158_v40 }
  0xed   :  { %v151_v48 = vpop.f32.mrf.mxu0 }
  0xee   :  { %v152_v49 = vadd.f32 %v151_v48, %v74_v46 }
  0xef   :  { %v153_v50 = vpop.f32.mrf.mxu0 }
  0xf0   :  { %v154_v51 = vadd.f32 %v153_v50, %v78_v47  ;;  %v156_v53 = vmax.f32 %v152_v49, 0.0 }
  0xf2   :  { %v157_v52 = vmax.f32 %v154_v51, 0.0 }
  0xf4   :  { %261 = vmatprep.mubr.f32.mxu1 %v157_v52 }
  0xf5   :  { %262 = vmatmul.mubr.f32.vlgmr.msra.gmra.mxu1 %v156_v53 }
 0x1b5   :  { %v319_v54 = vpop.f32.mrf.mxu1 }
 0x1b7   :  { %v320_v56 = vpop.f32.mrf.mxu1 }
 0x1b8   :  { %v321_v57 = vadd.f32 %v320_v56, %v319_v54 }
 0x1ba   :  { %v264_v58 = vadd.f32 %v321_v57, %v286_v55 }
 0x1bc   :  { %v267_v59 = vmax.f32 %v264_v58, 0.0 }
 0x1be   :  { %268 = vst [vmem:[#allocation8] sm:$0xff] %v267_v59 }
 0x1bf   :  { %402 = shalt.err (!%p399_p5)
}
 0x1c0   :  { %278 = dma.vmem_to_hbm [thread:$0]  %s276_s2, 128, %s479_s5, [#allocation4]  }
 0x1c1   :  { %415 = dma.done.wait [#allocation4], 128  }
 0x1c2   :  { %416 = vsyncadd [#allocation4], 4294967168 }
 0x1c3   :  { %282 = vsyncpa [#allocation3], 1 }
 0x1c4   :  { %283 = vsyncpa [#allocation6], 1 }
 0x1c5   :  { %284 = vsyncpa [#allocation4], 1 }

</bundles_post_ra>
